<compile_context>
chip_gen: v5e
topology: v5e:2x2
jax: 0.10.0
libtpu: 0.0.40
codegen_flags: <defaults>
</compile_context>

<pallas_src>
import functools

import jax
import jax.numpy as jnp
from jax.experimental import pallas as pl
from jax.experimental.pallas import tpu as pltpu

_P = 128  # lane width every fused layer is padded to


# ----------------------------- Pallas kernel -------------------------------


def _readout_kernel(h0_ref, hT_ref, mask_ref, w0a_ref, w0b_ref, w1_ref,
                    w2_ref, w3_ref, bias_ref, out_ref, *, n_nodes, g_graphs):
  """One grid step = G graphs = G*N node rows.

  h0_ref  : (R, D)   bf16 node features h[0]
  hT_ref  : (R, D)   bf16 node features h[-1]
  mask_ref: (R, 1)   f32  node-exists mask (computed in wrapper from f32 h0)
  w0a_ref : (D, P)   bf16 packed first layer, h0 -> NNet0
  w0b_ref : (D, P)   bf16 packed first layer, hT -> [NNet0 | NNet1]
  w1_ref  : (P, P)   bf16 block-diag layer 1  [w1 | v1]
  w2_ref  : (P, P)   bf16 block-diag layer 2  [w2 | v2]
  w3_ref  : (P, 2P)  bf16 packed output layer: cols[:P]=gate logits, cols[P:]=j
  bias_ref: (8, 2P)  f32  packed biases (rows 0..3 used)
  out_ref : (G, P)   f32  per-graph sums (real targets in lanes [:T])
  """
  p = out_ref.shape[1]                           # = _P
  bias = bias_ref[...]                           # (8, 2P) f32
  mxu_dt = w1_ref.dtype                          # bf16

  # Fused MLP: each dot computes NNet0 and NNet1 side by side (f32 accum).
  x = (jnp.dot(h0_ref[...], w0a_ref[...], preferred_element_type=jnp.float32)
       + jnp.dot(hT_ref[...], w0b_ref[...], preferred_element_type=jnp.float32)
       + bias[0:1, :p])
  x = jnp.maximum(x, 0.0)
  x = jnp.maximum(
      jnp.dot(x.astype(mxu_dt), w1_ref[...],
              preferred_element_type=jnp.float32) + bias[1:2, :p], 0.0)
  x = jnp.maximum(
      jnp.dot(x.astype(mxu_dt), w2_ref[...],
              preferred_element_type=jnp.float32) + bias[2:3, :p], 0.0)
  z = jnp.dot(x.astype(mxu_dt), w3_ref[...],
              preferred_element_type=jnp.float32) + bias[3:4, :]

  # gate = sigmoid(gate_logits): exp on EUP, approx reciprocal on EUP (no div).
  gate = pl.reciprocal(1.0 + jnp.exp(-z[:, :p]), approx=True)    # (R, P)
  # mask * gate * j ; padded lanes stay zero: gate lane = 0.5 * j lane = 0.
  res = mask_ref[...] * gate * z[:, p:]                          # (R, P) f32

  # per-graph segmented sum: pure sublane reduction (N is a multiple of 8).
  out_ref[...] = jnp.sum(res.reshape(g_graphs, n_nodes, p), axis=1)


# --------------------------- weight packing (wrapper) ------------------------


def _pack_params(params, d_in, target):
  h1 = params["w1"].shape[0]
  h2 = params["w2"].shape[0]
  h3 = params["w3"].shape[0]
  p = _P
  assert 2 * h1 <= p and 2 * h2 <= p and 2 * h3 <= p and target <= p, (
      "fused hidden widths must fit in one 128-lane tile")

  f32, bf16 = jnp.float32, jnp.bfloat16
  # first layer, split so the kernel never needs a materialized concat:
  w0a = jnp.zeros((d_in, p), f32).at[:, :h1].set(params["w0a"])
  w0b = (jnp.zeros((d_in, p), f32)
         .at[:, :h1].set(params["w0b"])
         .at[:, h1:2 * h1].set(params["v0"]))
  # layers 1-2: block diagonal [NNet0 | NNet1]
  w1 = (jnp.zeros((p, p), f32)
        .at[:h1, :h2].set(params["w1"])
        .at[h1:2 * h1, h2:2 * h2].set(params["v1"]))
  w2 = (jnp.zeros((p, p), f32)
        .at[:h2, :h3].set(params["w2"])
        .at[h2:2 * h2, h3:2 * h3].set(params["v2"]))
  # output layer: lanes [:P] -> gate logits, lanes [P:] -> j
  w3 = (jnp.zeros((p, 2 * p), f32)
        .at[:h3, :target].set(params["w3"])
        .at[h3:2 * h3, p:p + target].set(params["v3"]))
  # packed bias slab (8 sublanes x 2P lanes), kept f32 (VPU adds)
  bias = jnp.zeros((8, 2 * p), f32)
  bias = bias.at[0, :h1].set(params["b0"][0]).at[0, h1:2 * h1].set(params["c0"][0])
  bias = bias.at[1, :h2].set(params["b1"][0]).at[1, h2:2 * h2].set(params["c1"][0])
  bias = bias.at[2, :h3].set(params["b2"][0]).at[2, h3:2 * h3].set(params["c2"][0])
  bias = bias.at[3, :target].set(params["b3"][0]).at[3, p:p + target].set(params["c3"][0])
  # MXU operands in bf16, biases stay f32.
  return (w0a.astype(bf16), w0b.astype(bf16), w1.astype(bf16),
          w2.astype(bf16), w3.astype(bf16), bias)


# ------------------------------ tile sizing ----------------------------------


def _choose_graphs_per_step(batch, n_nodes, rows_per_step):
  """Graphs per grid step: multiple of 8, ~rows_per_step node rows, capped so
  v7x's two TensorCores both get grid steps, biased away from configurations
  that pad the batch with many dead graphs."""
  g_max = max(8, (max(1, rows_per_step // max(n_nodes, 1)) // 8) * 8)
  g_max = min(g_max, pl.cdiv(batch, 8) * 8)
  if batch >= 16:
    # leave at least 2 grid steps so the "parallel" axis can use both v7x TCs
    g_max = min(g_max, max(8, ((batch // 2) // 8) * 8))
  overhead_rows = 256  # ~600-cycle per-step overhead expressed in node rows
  best_g, best_cost = 8, None
  for g in range(8, g_max + 1, 8):
    steps = pl.cdiv(batch, g)
    cost = steps * g * n_nodes + steps * overhead_rows
    if best_cost is None or cost < best_cost:
      best_g, best_cost = g, cost
  return best_g


# ------------------------------ JAX wrapper ---------------------------------


def readout_mpnn(h0, hT, params, *, rows_per_step=2048):
  """h0, hT: (B, N, D).  Returns (B, T) float32 (matches ReadoutFunction mpnn)."""
  B, N, D = h0.shape
  T = params["w3"].shape[1]
  P = _P

  h0f = h0.astype(jnp.float32)
  hTf = hT.astype(jnp.float32)

  # pad node dim to a multiple of 8 (padded nodes have h0 == 0 -> mask == 0)
  N_pad = pl.cdiv(N, 8) * 8
  if N_pad > N:
    h0f = jnp.pad(h0f, ((0, 0), (0, N_pad - N), (0, 0)))
    hTf = jnp.pad(hTf, ((0, 0), (0, N_pad - N), (0, 0)))

  G = _choose_graphs_per_step(B, N_pad, rows_per_step)
  B_pad = pl.cdiv(B, G) * G
  if B_pad > B:  # padded graphs are all-zero -> mask == 0 -> contribute nothing
    h0f = jnp.pad(h0f, ((0, B_pad - B), (0, 0), (0, 0)))
    hTf = jnp.pad(hTf, ((0, B_pad - B), (0, 0), (0, 0)))
  R = G * N_pad

  # node-exists mask from f32 h0, BEFORE the bf16 cast (sign-safe), in wrapper
  mask = (jnp.sum(h0f, axis=-1, keepdims=True) > 0.0).astype(jnp.float32)
  mask = mask.reshape(B_pad * N_pad, 1)
  # MXU operands in bf16 (halves the dominant HBM stream; f32 accum in-kernel)
  x0 = h0f.astype(jnp.bfloat16).reshape(B_pad * N_pad, D)
  xT = hTf.astype(jnp.bfloat16).reshape(B_pad * N_pad, D)

  w0a, w0b, w1, w2, w3, bias = _pack_params(params, D, T)

  # explicit VMEM budget (double-buffered per-step blocks + weights + temps),
  # capped at 32 MiB so it is valid on v5e (16 MiB default scoped), v6e, v7x.
  weight_bytes = int(sum(int(a.size) * a.dtype.itemsize
                         for a in (w0a, w0b, w1, w2, w3, bias)))
  block_bytes = 2 * (2 * R * D * 2 + R * 4 + G * P * 4)
  interm_bytes = R * P * 4 * 4 + R * 2 * P * 4
  vmem_limit = int(min(32 * 1024 * 1024,
                       max(16 * 1024 * 1024,
                           2 * (2 * weight_bytes + block_bytes + interm_bytes))))

  kernel = functools.partial(_readout_kernel, n_nodes=N_pad, g_graphs=G)
  full = lambda a: pl.BlockSpec(a.shape, lambda i: (0, 0))  # grid-invariant

  out = pl.pallas_call(
      kernel,
      out_shape=jax.ShapeDtypeStruct((B_pad, P), jnp.float32),
      grid=(B_pad // G,),
      in_specs=[pl.BlockSpec((R, D), lambda i: (i, 0)),   # h0 rows
                pl.BlockSpec((R, D), lambda i: (i, 0)),   # hT rows
                pl.BlockSpec((R, 1), lambda i: (i, 0)),   # mask
                full(w0a), full(w0b), full(w1), full(w2), full(w3), full(bias)],
      out_specs=pl.BlockSpec((G, P), lambda i: (i, 0)),
      compiler_params=pltpu.CompilerParams(
          dimension_semantics=("parallel",),
          vmem_limit_bytes=vmem_limit),
  )(x0, xT, mask, w0a, w0b, w1, w2, w3, bias)
  return out[:B, :T]


# ----------------------- deterministic parameter init -----------------------


def _linear_init(key, fan_in, fan_out):
  # PyTorch nn.Linear default: U(-1/sqrt(fan_in), 1/sqrt(fan_in))
  kw, kb = jax.random.split(key)
  bound = 1.0 / jnp.sqrt(jnp.float32(fan_in))
  w = jax.random.uniform(kw, (fan_in, fan_out), jnp.float32, -bound, bound)
  b = jax.random.uniform(kb, (1, fan_out), jnp.float32, -bound, bound)
  return w, b


def init_params(key, d_in, target, hlayers=(32, 64, 32)):
  h1, h2, h3 = hlayers
  keys = jax.random.split(key, 8)
  params = {}
  # NNet0: input 2*d_in -> split the first weight into h0 part and hT part
  w0_full, b0 = _linear_init(keys[0], 2 * d_in, h1)
  params["w0a"], params["w0b"], params["b0"] = w0_full[:d_in], w0_full[d_in:], b0
  params["w1"], params["b1"] = _linear_init(keys[1], h1, h2)
  params["w2"], params["b2"] = _linear_init(keys[2], h2, h3)
  params["w3"], params["b3"] = _linear_init(keys[3], h3, target)
  # NNet1: input d_in
  params["v0"], params["c0"] = _linear_init(keys[4], d_in, h1)
  params["v1"], params["c1"] = _linear_init(keys[5], h1, h2)
  params["v2"], params["c2"] = _linear_init(keys[6], h2, h3)
  params["v3"], params["c3"] = _linear_init(keys[7], h3, target)
  return params


# ----------------------------- pure-JAX reference ----------------------------


def readout_ref(h0, hT, params):
  def mlp0(x):
    d = params["w0a"].shape[0]
    x = jax.nn.relu(x[:, :d] @ params["w0a"] + x[:, d:] @ params["w0b"] + params["b0"])
    x = jax.nn.relu(x @ params["w1"] + params["b1"])
    x = jax.nn.relu(x @ params["w2"] + params["b2"])
    return x @ params["w3"] + params["b3"]

  def mlp1(x):
    x = jax.nn.relu(x @ params["v0"] + params["c0"])
    x = jax.nn.relu(x @ params["v1"] + params["c1"])
    x = jax.nn.relu(x @ params["v2"] + params["c2"])
    return x @ params["v3"] + params["c3"]

  def per_graph(h0_i, hT_i):
    gate = jax.nn.sigmoid(mlp0(jnp.concatenate([h0_i, hT_i], axis=1)))
    res = gate * mlp1(hT_i)
    mask = (jnp.sum(h0_i, axis=1, keepdims=True) > 0).astype(res.dtype)
    return jnp.sum(mask * res, axis=0)

  return jax.vmap(per_graph)(h0, hT)


# ---------------------------------- main ------------------------------------


if __name__ == "__main__":
  B, N, D, T = 2, 8, 16, 8            # batch graphs, nodes, hidden dim, targets

  key = jax.random.PRNGKey(0)
  k_p, k_h0, k_hT = jax.random.split(key, 3)

  params = init_params(k_p, d_in=D, target=T)
  h0 = jax.random.normal(k_h0, (B, N, D), jnp.float32)   # h[0]
  hT = jax.random.normal(k_hT, (B, N, D), jnp.float32)   # h[-1]

  out = readout_mpnn(h0, hT, params)
  out = jax.block_until_ready(out)

  ref = readout_ref(h0, hT, params)
  assert out.shape == (B, T)
  # MXU operands are bf16 (per perf review) with f32 accumulation, so compare
  # against the f32 reference with a bf16-appropriate tolerance.
  assert jnp.allclose(out, ref, atol=1e-1, rtol=1e-1), (out, ref)

  print("KERNEL_OK")
</pallas_src>

<mosaic_0001>
module attributes {stable_mosaic.version = 11 : i64} {
  func.func @_readout_kernel(%arg0: i32, %arg1: memref<64x16xbf16, #tpu.memory_space<vmem>>, %arg2: memref<64x16xbf16, #tpu.memory_space<vmem>>, %arg3: memref<64x1xf32, #tpu.memory_space<vmem>>, %arg4: memref<16x128xbf16, #tpu.memory_space<vmem>>, %arg5: memref<16x128xbf16, #tpu.memory_space<vmem>>, %arg6: memref<128x128xbf16, #tpu.memory_space<vmem>>, %arg7: memref<128x128xbf16, #tpu.memory_space<vmem>>, %arg8: memref<128x256xbf16, #tpu.memory_space<vmem>>, %arg9: memref<8x256xf32, #tpu.memory_space<vmem>>, %arg10: memref<8x128xf32, #tpu.memory_space<vmem>>) attributes {dimension_semantics = [#tpu.dimension_semantics<parallel>], iteration_bounds = array<i64: 1>, scalar_prefetch = 0 : i64, scratch_operands = 0 : i64, tpu.core_type = #tpu.core_type<tc>, window_params = [{transform_indices = @transform_0, window_bounds = array<i64: 64, 16>}, {transform_indices = @transform_1, window_bounds = array<i64: 64, 16>}, {transform_indices = @transform_2, window_bounds = array<i64: 64, 1>}, {pipeline_mode = #tpu.pipeline_mode<synchronous>, transform_indices = @transform_3, window_bounds = array<i64: 16, 128>}, {pipeline_mode = #tpu.pipeline_mode<synchronous>, transform_indices = @transform_4, window_bounds = array<i64: 16, 128>}, {pipeline_mode = #tpu.pipeline_mode<synchronous>, transform_indices = @transform_5, window_bounds = array<i64: 128, 128>}, {pipeline_mode = #tpu.pipeline_mode<synchronous>, transform_indices = @transform_6, window_bounds = array<i64: 128, 128>}, {pipeline_mode = #tpu.pipeline_mode<synchronous>, transform_indices = @transform_7, window_bounds = array<i64: 128, 256>}, {pipeline_mode = #tpu.pipeline_mode<synchronous>, transform_indices = @transform_8, window_bounds = array<i64: 8, 256>}, {transform_indices = @transform_9, window_bounds = array<i64: 8, 128>}]} {
    %c0 = arith.constant 0 : index
    %c0_0 = arith.constant 0 : index
    %0 = vector.load %arg9[%c0, %c0_0] : memref<8x256xf32, #tpu.memory_space<vmem>>, vector<8x256xf32>
    %c0_1 = arith.constant 0 : index
    %c0_2 = arith.constant 0 : index
    %1 = vector.load %arg1[%c0_1, %c0_2] : memref<64x16xbf16, #tpu.memory_space<vmem>>, vector<64x16xbf16>
    %c0_3 = arith.constant 0 : index
    %c0_4 = arith.constant 0 : index
    %2 = vector.load %arg4[%c0_3, %c0_4] : memref<16x128xbf16, #tpu.memory_space<vmem>>, vector<16x128xbf16>
    %cst = arith.constant dense<0.000000e+00> : vector<64x128xf32>
    %3 = tpu.matmul %1, %2, %cst {dimension_numbers = #tpu.dot_dimension_numbers<[1], [0], [0], [1], [0, 0, 1, 1], [], []>} : vector<64x16xbf16>, vector<16x128xbf16>, vector<64x128xf32> -> vector<64x128xf32>
    %c0_5 = arith.constant 0 : index
    %c0_6 = arith.constant 0 : index
    %4 = vector.load %arg2[%c0_5, %c0_6] : memref<64x16xbf16, #tpu.memory_space<vmem>>, vector<64x16xbf16>
    %c0_7 = arith.constant 0 : index
    %c0_8 = arith.constant 0 : index
    %5 = vector.load %arg5[%c0_7, %c0_8] : memref<16x128xbf16, #tpu.memory_space<vmem>>, vector<16x128xbf16>
    %cst_9 = arith.constant dense<0.000000e+00> : vector<64x128xf32>
    %6 = tpu.matmul %4, %5, %cst_9 {dimension_numbers = #tpu.dot_dimension_numbers<[1], [0], [0], [1], [0, 0, 1, 1], [], []>} : vector<64x16xbf16>, vector<16x128xbf16>, vector<64x128xf32> -> vector<64x128xf32>
    %7 = arith.addf %3, %6 : vector<64x128xf32>
    %8 = vector.extract_strided_slice %0 {offsets = [0, 0], sizes = [1, 128], strides = [1, 1]} : vector<8x256xf32> to vector<1x128xf32>
    %9 = vector.broadcast %8 : vector<1x128xf32> to vector<64x128xf32>
    %10 = arith.addf %7, %9 : vector<64x128xf32>
    %cst_10 = arith.constant 0.000000e+00 : f32
    %11 = vector.broadcast %cst_10 : f32 to vector<64x128xf32>
    %12 = arith.maximumf %10, %11 : vector<64x128xf32>
    %13 = arith.truncf %12 : vector<64x128xf32> to vector<64x128xbf16>
    %c0_11 = arith.constant 0 : index
    %c0_12 = arith.constant 0 : index
    %14 = vector.load %arg6[%c0_11, %c0_12] : memref<128x128xbf16, #tpu.memory_space<vmem>>, vector<128x128xbf16>
    %cst_13 = arith.constant dense<0.000000e+00> : vector<64x128xf32>
    %15 = tpu.matmul %13, %14, %cst_13 {dimension_numbers = #tpu.dot_dimension_numbers<[1], [0], [0], [1], [0, 0, 1, 1], [], []>} : vector<64x128xbf16>, vector<128x128xbf16>, vector<64x128xf32> -> vector<64x128xf32>
    %16 = vector.extract_strided_slice %0 {offsets = [1, 0], sizes = [1, 128], strides = [1, 1]} : vector<8x256xf32> to vector<1x128xf32>
    %17 = vector.broadcast %16 : vector<1x128xf32> to vector<64x128xf32>
    %18 = arith.addf %15, %17 : vector<64x128xf32>
    %cst_14 = arith.constant 0.000000e+00 : f32
    %19 = vector.broadcast %cst_14 : f32 to vector<64x128xf32>
    %20 = arith.maximumf %18, %19 : vector<64x128xf32>
    %21 = arith.truncf %20 : vector<64x128xf32> to vector<64x128xbf16>
    %c0_15 = arith.constant 0 : index
    %c0_16 = arith.constant 0 : index
    %22 = vector.load %arg7[%c0_15, %c0_16] : memref<128x128xbf16, #tpu.memory_space<vmem>>, vector<128x128xbf16>
    %cst_17 = arith.constant dense<0.000000e+00> : vector<64x128xf32>
    %23 = tpu.matmul %21, %22, %cst_17 {dimension_numbers = #tpu.dot_dimension_numbers<[1], [0], [0], [1], [0, 0, 1, 1], [], []>} : vector<64x128xbf16>, vector<128x128xbf16>, vector<64x128xf32> -> vector<64x128xf32>
    %24 = vector.extract_strided_slice %0 {offsets = [2, 0], sizes = [1, 128], strides = [1, 1]} : vector<8x256xf32> to vector<1x128xf32>
    %25 = vector.broadcast %24 : vector<1x128xf32> to vector<64x128xf32>
    %26 = arith.addf %23, %25 : vector<64x128xf32>
    %cst_18 = arith.constant 0.000000e+00 : f32
    %27 = vector.broadcast %cst_18 : f32 to vector<64x128xf32>
    %28 = arith.maximumf %26, %27 : vector<64x128xf32>
    %29 = arith.truncf %28 : vector<64x128xf32> to vector<64x128xbf16>
    %c0_19 = arith.constant 0 : index
    %c0_20 = arith.constant 0 : index
    %30 = vector.load %arg8[%c0_19, %c0_20] : memref<128x256xbf16, #tpu.memory_space<vmem>>, vector<128x256xbf16>
    %cst_21 = arith.constant dense<0.000000e+00> : vector<64x256xf32>
    %31 = tpu.matmul %29, %30, %cst_21 {dimension_numbers = #tpu.dot_dimension_numbers<[1], [0], [0], [1], [0, 0, 1, 1], [], []>} : vector<64x128xbf16>, vector<128x256xbf16>, vector<64x256xf32> -> vector<64x256xf32>
    %32 = vector.extract_strided_slice %0 {offsets = [3, 0], sizes = [1, 256], strides = [1, 1]} : vector<8x256xf32> to vector<1x256xf32>
    %33 = vector.broadcast %32 : vector<1x256xf32> to vector<64x256xf32>
    %34 = arith.addf %31, %33 : vector<64x256xf32>
    %35 = vector.extract_strided_slice %34 {offsets = [0, 0], sizes = [64, 128], strides = [1, 1]} : vector<64x256xf32> to vector<64x128xf32>
    %cst_22 = arith.constant 0.000000e+00 : f32
    %36 = vector.broadcast %cst_22 : f32 to vector<64x128xf32>
    %37 = arith.subf %36, %35 : vector<64x128xf32>
    %38 = math.exp %37 : vector<64x128xf32>
    %cst_23 = arith.constant 1.000000e+00 : f32
    %39 = vector.broadcast %cst_23 : f32 to vector<64x128xf32>
    %40 = arith.addf %39, %38 : vector<64x128xf32>
    %41 = tpu.reciprocal %40 {approx = true} : vector<64x128xf32> -> vector<64x128xf32>
    %c0_24 = arith.constant 0 : index
    %c0_25 = arith.constant 0 : index
    %42 = vector.load %arg3[%c0_24, %c0_25] : memref<64x1xf32, #tpu.memory_space<vmem>>, vector<64x1xf32>
    %43 = vector.broadcast %42 : vector<64x1xf32> to vector<64x128xf32>
    %44 = arith.mulf %43, %41 : vector<64x128xf32>
    %45 = vector.extract_strided_slice %34 {offsets = [0, 128], sizes = [64, 128], strides = [1, 1]} : vector<64x256xf32> to vector<64x128xf32>
    %46 = arith.mulf %44, %45 : vector<64x128xf32>
    %47 = vector.shape_cast %46 : vector<64x128xf32> to vector<8x8x128xf32>
    %cst_26 = arith.constant dense<0.000000e+00> : vector<8x128xf32>
    %48 = vector.multi_reduction <add>, %47, %cst_26 [1] : vector<8x8x128xf32> to vector<8x128xf32>
    %c0_27 = arith.constant 0 : index
    %c0_28 = arith.constant 0 : index
    %49 = vector.load %arg10[%c0_27, %c0_28] : memref<8x128xf32, #tpu.memory_space<vmem>>, vector<8x128xf32>
    tpu.vector_store %arg10[%c0_27, %c0_28], %48 {strides = array<i32>} : memref<8x128xf32, #tpu.memory_space<vmem>>, vector<8x128xf32>,
    return
  }
  func.func @transform_0(%arg0: i32) -> (i32, i32) {
    %c0_i32 = arith.constant 0 : i32
    %c0_i32_0 = arith.constant 0 : i32
    return %arg0, %c0_i32 : i32, i32
  }
  func.func @transform_1(%arg0: i32) -> (i32, i32) {
    %c0_i32 = arith.constant 0 : i32
    %c0_i32_0 = arith.constant 0 : i32
    return %arg0, %c0_i32 : i32, i32
  }
  func.func @transform_2(%arg0: i32) -> (i32, i32) {
    %c0_i32 = arith.constant 0 : i32
    %c0_i32_0 = arith.constant 0 : i32
    return %arg0, %c0_i32 : i32, i32
  }
  func.func @transform_3(%arg0: i32) -> (i32, i32) {
    %c0_i32 = arith.constant 0 : i32
    %c0_i32_0 = arith.constant 0 : i32
    %c0_i32_1 = arith.constant 0 : i32
    return %c0_i32, %c0_i32_0 : i32, i32
  }
  func.func @transform_4(%arg0: i32) -> (i32, i32) {
    %c0_i32 = arith.constant 0 : i32
    %c0_i32_0 = arith.constant 0 : i32
    %c0_i32_1 = arith.constant 0 : i32
    return %c0_i32, %c0_i32_0 : i32, i32
  }
  func.func @transform_5(%arg0: i32) -> (i32, i32) {
    %c0_i32 = arith.constant 0 : i32
    %c0_i32_0 = arith.constant 0 : i32
    %c0_i32_1 = arith.constant 0 : i32
    return %c0_i32, %c0_i32_0 : i32, i32
  }
  func.func @transform_6(%arg0: i32) -> (i32, i32) {
    %c0_i32 = arith.constant 0 : i32
    %c0_i32_0 = arith.constant 0 : i32
    %c0_i32_1 = arith.constant 0 : i32
    return %c0_i32, %c0_i32_0 : i32, i32
  }
  func.func @transform_7(%arg0: i32) -> (i32, i32) {
    %c0_i32 = arith.constant 0 : i32
    %c0_i32_0 = arith.constant 0 : i32
    %c0_i32_1 = arith.constant 0 : i32
    return %c0_i32, %c0_i32_0 : i32, i32
  }
  func.func @transform_8(%arg0: i32) -> (i32, i32) {
    %c0_i32 = arith.constant 0 : i32
    %c0_i32_0 = arith.constant 0 : i32
    %c0_i32_1 = arith.constant 0 : i32
    return %c0_i32, %c0_i32_0 : i32, i32
  }
  func.func @transform_9(%arg0: i32) -> (i32, i32) {
    %c0_i32 = arith.constant 0 : i32
    %c0_i32_0 = arith.constant 0 : i32
    return %arg0, %c0_i32 : i32, i32
  }
}

</mosaic_0001>

<bundles_post_ra>
// kernel: tpu_custom_call.1
= control target key start
LH: loop header
LB: loop body
LE: loop exit
PB: predicated region body
PF: predicated region fallthrough
CT: control target
= control target key end

     0   :  { %14 = vsyncpa [#allocation3], 0  ;;  %s1408_s0 = inlined_call_operand.vmem [shape: bf16[64,16], index: 0, kind: input, shape index: {}]   ;;  %s1409_s1 = inlined_call_operand.vmem [shape: bf16[64,16], index: 1, kind: input, shape index: {}]   ;;  %s1410_s2 = inlined_call_operand.vmem [shape: f32[64,1], index: 2, kind: input, shape index: {}]   ;;  %s1411_s3 = inlined_call_operand.vmem [shape: bf16[16,128], index: 3, kind: input, shape index: {}]   ;;  %s1412_s4 = inlined_call_operand.hbm [shape: bf16[16,128], index: 4, kind: input, shape index: {}]   ;;  %s1413_s5 = inlined_call_operand.vmem [shape: bf16[128,128], index: 5, kind: input, shape index: {}]   ;;  %s1414_s6 = inlined_call_operand.vmem [shape: bf16[128,128], index: 6, kind: input, shape index: {}]   ;;  %s1415_s7 = inlined_call_operand.hbm [shape: bf16[128,256], index: 7, kind: input, shape index: {}]   ;;  %s1416_s8 = inlined_call_operand.hbm [shape: f32[8,256], index: 8, kind: input, shape index: {}]   ;;  %s1417_s9 = inlined_call_operand.hbm [shape: f32[8,128], index: 9, kind: output, shape index: {}]  }
   0x1   :  { %15 = vsyncpa [#allocation6], 0  ;;  %s46_s11 = sshll.u32 %s1415_s7, 4  ;;  %s47_s11 = int_to_ptr.hbm [resolvable:$true] %s46_s11 }
   0x2   :  { %16 = vsyncpa [#allocation4], 0  ;;  %s1185_s12 = smov [#allocation5]   ;;  %s29_s16 = sshll.u32 %s1412_s4, 4  ;;  %s30_s16 = int_to_ptr.hbm [resolvable:$true] %s29_s16 }
   0x3   :  { %s48_s13 = sshll.u32 %s1185_s12, 4  ;;  %s1186_s17 = smov 128   ;;  %s49_s13 = int_to_ptr.vmem [resolvable:$true] %s48_s13 }
   0x4   :  { %s1187_s18 = smov 8   ;;  %s1188_s19 = smov [#allocation2]  }
   0x5   :  { %54 = dma.hbm_to_vmem [thread:$0]  %s47_s11, 2048, %s49_s13, [#allocation6], %s1186_s17, %s1186_s17, %s1187_s18  }
   0x6   :  { %s31_s20 = sshll.u32 %s1188_s19, 4  ;;  %s1189_s21 = smov 64   ;;  %s32_s20 = int_to_ptr.vmem [resolvable:$true] %s31_s20 }
   0x7   :  { %s1190_s22 = smov 4   ;;  %s60_s24 = sshll.u32 %s1416_s8, 4  ;;  %s61_s24 = int_to_ptr.hbm [resolvable:$true] %s60_s24 }
   0x8   :  { %37 = dma.hbm_to_vmem [thread:$0]  %s30_s16, 128, %s32_s20, [#allocation3], %s1189_s21, %s1189_s21, %s1190_s22  }
   0x9   :  { %s1191_s25 = smov [#allocation7]  }
   0xa   :  { %s62_s26 = sshll.u32 %s1191_s25, 4  ;;  %s63_s26 = int_to_ptr.vmem [resolvable:$true] %s62_s26 }
   0xb   :  { %65 = dma.hbm_to_vmem [thread:$0]  %s61_s24, 256, %s63_s26, [#allocation6]  }
   0xc   :  { %1179 = dma.done.wait [#allocation3], 128  }
   0xd   :  { %1180 = vsyncadd [#allocation3], 4294967168 }
   0xe   :  { %1181 = dma.done.wait [#allocation6], 2304  }
   0xf   :  { %1182 = vsyncadd [#allocation6], 4294964992  ;;  %v1004_v0 = vld [vmem:[#allocation2] sm:$0xff]  ;;  %vm127_vm0 = vcmask 130048   ;;  %v1002_v4 = vld [vmem:[%s1409_s1 + $0x10] sm:$0xff]  ;;  %vm785_vm1 = vcmask 1041409  }
  0x10   :  { %v999_v1 = vld [vmem:[%s1411_s3] sm:$0xff]  ;;  %147 = vmatpush.bf16.msra.mxu0 %v1004_v0  ;;  %v997_v5 = vld [vmem:[%s1408_s0 + $0x10] sm:$0xff]  ;;  %1037 = vmatpush.bf16.msra.mxu2 %v1004_v0  ;;  %v1012_v6 = vld [vmem:[%s1413_s5 + $0x38] sm:$0xff]  ;;  %vm787_vm2 = vcmask 1042434   ;;  %vm789_vm3 = vcmask 1043459   ;;  %vm791_vm4 = vcmask 1044484  }
  0x11   :  { %v1000_v2 = vld [vmem:[%s1409_s1] sm:$0xff]  ;;  %214 = vmatpush.bf16.msra.mxu1 %v999_v1  ;;  %1038 = vmatpush.bf16.msra.mxu3 %v999_v1  ;;  %v1011_v7 = vld [vmem:[%s1413_s5 + $0x30] sm:$0xff]  ;;  %v1010_v8 = vld [vmem:[%s1413_s5 + $0x28] sm:$0xff]  ;;  %vm793_vm5 = vcmask 1045509   ;;  %vm795_vm6 = vcmask 1046534   ;;  %s808_s15 = sshll.u32 %s1417_s9, 4  ;;  %s809_s15 = int_to_ptr.hbm [resolvable:$true] %s808_s15 }
  0x12   :  { %v995_v3 = vld [vmem:[%s1408_s0] sm:$0xff]  ;;  %v1001_v10 = vld [vmem:[%s1409_s1 + $0x8] sm:$0xff]  ;;  %v1003_v12 = vld [vmem:[%s1409_s1 + $0x18] sm:$0xff]  ;;  %vm797_vm7 = vcmask 1047559  }
  0x13   :  { %839 = vmatmul.msk.bf16.vlgmr.msra.gmra.mxu0 %vm127_vm0, %v1000_v2  ;;  %841 = vmatmul.msk.bf16.vlgmr.msra.gmra.mxu2 %vm127_vm0, %v1002_v4  ;;  %v1009_v9 = vld [vmem:[%s1413_s5 + $0x20] sm:$0xff]  ;;  %v996_v11 = vld [vmem:[%s1408_s0 + $0x8] sm:$0xff]  ;;  %v998_v13 = vld [vmem:[%s1408_s0 + $0x18] sm:$0xff] }
  0x14   :  { %863 = vmatmul.msk.bf16.vlgmr.msra.gmra.mxu1 %vm127_vm0, %v995_v3  ;;  %865 = vmatmul.msk.bf16.vlgmr.msra.gmra.mxu3 %vm127_vm0, %v997_v5  ;;  %v1008_v14 = vld [vmem:[%s1413_s5 + $0x18] sm:$0xff]  ;;  %v1007_v15 = vld [vmem:[%s1413_s5 + $0x10] sm:$0xff]  ;;  %v1006_v16 = vld [vmem:[%s1413_s5 + $0x8] sm:$0xff] }
  0x15   :  { %322 = vmatpush.bf16.msrb.mxu2 %v1012_v6  ;;  %v1005_v17 = vld [vmem:[%s1413_s5] sm:$0xff]  ;;  %v1312_v20 = vld [vmem:[#allocation7] sm:$0xff]  ;;  %v1020_v46 = vld [vmem:[%s1414_s6 + $0x38] sm:$0xff] }
  0x16   :  { %v236_v22 = vperm.slane %v1312_v20, 0  ;;  %428 = vmatpush.bf16.msrb.mxu3 %v1020_v46  ;;  %v1019_v49 = vld [vmem:[%s1414_s6 + $0x30] sm:$0xff]  ;;  %v1018_v54 = vld [vmem:[%s1414_s6 + $0x28] sm:$0xff]  ;;  %v1017_v57 = vld [vmem:[%s1414_s6 + $0x20] sm:$0xff] }
  0x17   :  { %v1016_v59 = vld [vmem:[%s1414_s6 + $0x18] sm:$0xff]  ;;  %v1015_v5 = vld [vmem:[%s1414_s6 + $0x10] sm:$0xff]  ;;  %v1014_v6 = vld [vmem:[%s1414_s6 + $0x8] sm:$0xff] }
  0x19   :  { %323 = vmatpush.bf16.msrb.mxu2 %v1011_v7  ;;  %v1013_v7 = vld [vmem:[%s1414_s6] sm:$0xff] }
  0x1a   :  { %429 = vmatpush.bf16.msrb.mxu3 %v1019_v49 }
  0x1d   :  { %324 = vmatpush.bf16.msrb.mxu2 %v1010_v8 }
  0x1e   :  { %430 = vmatpush.bf16.msrb.mxu3 %v1018_v54  ;;  %v957_v54 = vld [vmem:[#allocation5 + $0x30] sm:$0xf] }
  0x21   :  { %325 = vmatpush.bf16.msrb.mxu2 %v1009_v9  ;;  %v1340_v9 = vperm.slane %v1312_v20, 1 }
  0x22   :  { %431 = vmatpush.bf16.msrb.mxu3 %v1017_v57 }
  0x23   :  { %840 = vmatmul.msk.bf16.gmra.mxu0 %vm127_vm0, %v1001_v10  ;;  %842 = vmatmul.msk.bf16.gmra.mxu2 %vm127_vm0, %v1003_v12 }
  0x24   :  { %864 = vmatmul.msk.bf16.gmra.mxu1 %vm127_vm0, %v996_v11  ;;  %866 = vmatmul.msk.bf16.gmra.mxu3 %vm127_vm0, %v998_v13 }
  0x25   :  { %326 = vmatpush.bf16.msrb.mxu2 %v1008_v14 }
  0x26   :  { %432 = vmatpush.bf16.msrb.mxu3 %v1016_v59 }
  0x29   :  { %327 = vmatpush.bf16.msrb.mxu2 %v1007_v15 }
  0x2a   :  { %433 = vmatpush.bf16.msrb.mxu3 %v1015_v5  ;;  %v1026_v5 = vld [vmem:[#allocation5 + $0x24] sm:$0xf0] }
  0x2d   :  { %328 = vmatpush.bf16.msrb.mxu2 %v1006_v16 }
  0x2e   :  { %434 = vmatpush.bf16.msrb.mxu3 %v1014_v6  ;;  %v1025_v6 = vld [vmem:[#allocation5 + $0x24] sm:$0xf] }
  0x31   :  { %329 = vmatpush.bf16.msrb.mxu2 %v1005_v17 }
  0x32   :  { %435 = vmatpush.bf16.msrb.mxu3 %v1013_v7 }
  0x90   :  { %v149_v18 = vpop.f32.mrf.mxu0 }
  0x91   :  { %v216_v19 = vpop.f32.mrf.mxu1 }
  0x92   :  { %v217_v21 = vadd.f32 %v216_v19, %v149_v18 }
  0x94   :  { %v237_v25 = vadd.f32 %v236_v22, %v217_v21 }
  0x96   :  { %v245_v28 = vmax.f32 %v237_v25, 0.0  ;;  %v159_v33 = vpop.f32.mrf.mxu2  ;;  %v1036_v25 = vld [vmem:[#allocation5 + $0x74] sm:$0xf0] }
  0x97   :  { %v226_v34 = vpop.f32.mrf.mxu3 }
  0x98   :  { %v151_v23 = vpop.f32.mrf.mxu0  ;;  %v227_v47 = vadd.f32 %v226_v34, %v159_v33  ;;  %v1033_v33 = vld [vmem:[#allocation5 + $0x64] sm:$0xf]  ;;  %v983_v34 = vld [vmem:[#allocation5 + $0x68] sm:$0xf0] }
  0x99   :  { %v218_v24 = vpop.f32.mrf.mxu1 }
  0x9a   :  { %v219_v26 = vadd.f32 %v218_v24, %v151_v23  ;;  %v241_v52 = vadd.f32 %v236_v22, %v227_v47  ;;  %v989_v24 = vld [vmem:[#allocation5 + $0x70] sm:$0xf]  ;;  %v1029_v47 = vld [vmem:[#allocation5 + $0x44] sm:$0xf] }
  0x9c   :  { %v238_v27 = vadd.f32 %v236_v22, %v219_v26  ;;  %v249_v55 = vmax.f32 %v241_v52, 0.0  ;;  %v1035_v26 = vld [vmem:[#allocation5 + $0x74] sm:$0xf] }
  0x9e   :  { %v246_v29 = vmax.f32 %v238_v27, 0.0  ;;  %v161_v41 = vpop.f32.mrf.mxu2 }
  0x9f   :  { %v228_v42 = vpop.f32.mrf.mxu3 }
  0xa0   :  { %v253_v30 = vpack.c.bf16 %v246_v29, %v245_v28  ;;  %v154_v31 = vpop.f32.mrf.mxu0  ;;  %v229_v48 = vadd.f32 %v228_v42, %v161_v41  ;;  %v990_v28 = vor.u32 %v1036_v25, %v989_v24  ;;  %v991_v29 = vld [vmem:[#allocation5 + $0x78] sm:$0xf0]  ;;  %v379_v24 = vperm.slane %v1312_v20, 2 }
  0xa1   :  { %v221_v32 = vpop.f32.mrf.mxu1 }
  0xa2   :  { %330 = vmatmul.bf16.vlgmr.msrb.gmra.mxu2 %v253_v30  ;;  %v222_v35 = vadd.f32 %v221_v32, %v154_v31  ;;  %v242_v53 = vadd.f32 %v236_v22, %v229_v48  ;;  %v981_v30 = vld [vmem:[#allocation5 + $0x60] sm:$0xf]  ;;  %v1034_v31 = vld [vmem:[#allocation5 + $0x64] sm:$0xf0]  ;;  %v994_v32 = vor.u32 %v1035_v26, %v991_v29  ;;  %567 = vmatpush.bf16.msrb.mxu0 %v990_v28  ;;  %v967_v48 = vld [vmem:[#allocation5 + $0x48] sm:$0xf0] }
  0xa4   :  { %v239_v38 = vadd.f32 %v236_v22, %v222_v35  ;;  %v250_v56 = vmax.f32 %v242_v53, 0.0  ;;  %v982_v35 = vor.u32 %v1034_v31, %v981_v30  ;;  %596 = vmatpush.bf16.msrb.mxu1 %v994_v32  ;;  %v970_v53 = vor.u32 %v1029_v47, %v967_v48  ;;  %v665_v32 = vld [vmem:[%s1410_s2] sm:$0xff] }
  0xa5   :  { %v1192_v30 = vmov 0  }
  0xa6   :  { %v247_v43 = vmax.f32 %v239_v38, 0.0  ;;  %v164_v50 = vpop.f32.mrf.mxu2  ;;  %v255_v58 = vpack.c.bf16 %v250_v56, %v249_v55  ;;  %v1032_v38 = vld [vmem:[#allocation5 + $0x54] sm:$0xf0]  ;;  %568 = vmatpush.bf16.msrb.mxu0 %v982_v35  ;;  %1048 = vset.pattern.permute.xlu0 %v1192_v30 }
  0xa7   :  { %v231_v51 = vpop.f32.mrf.mxu3  ;;  %v1028_v55 = vld [vmem:[#allocation5 + $0x34] sm:$0xf0]  ;;  %1049 = vset.pattern.permute.xlu1 %v1192_v30  ;;  %1050 = vset.pattern.permute.xlu2 %v1192_v30 }
  0xa8   :  { %v156_v36 = vpop.f32.mrf.mxu0  ;;  %v232_v62 = vadd.f32 %v231_v51, %v164_v50  ;;  %v958_v57 = vor.u32 %v1028_v55, %v957_v54  ;;  %675 = vperm.xlu0 %1048, %v665_v32  }
  0xa9   :  { %v223_v37 = vpop.f32.mrf.mxu1 }
  0xaa   :  { %v224_v39 = vadd.f32 %v223_v37, %v156_v36  ;;  %v243_v0 = vadd.f32 %v236_v22, %v232_v62  ;;  %v986_v36 = vor.u32 %v1033_v33, %v983_v34  ;;  %v973_v37 = vld [vmem:[#allocation5 + $0x50] sm:$0xf]  ;;  %v666_v34 = vld [vmem:[%s1410_s2 + $0x8] sm:$0xff] }
  0xab   :  { %v974_v41 = vor.u32 %v1032_v38, %v973_v37 }
  0xac   :  { %v240_v40 = vadd.f32 %v236_v22, %v224_v39  ;;  %v251_v2 = vmax.f32 %v243_v0, 0.0  ;;  %v1031_v39 = vld [vmem:[#allocation5 + $0x54] sm:$0xf]  ;;  %597 = vmatpush.bf16.msrb.mxu1 %v986_v36 }
  0xad   :  { %569 = vmatpush.bf16.msrb.mxu0 %v974_v41  ;;  %v667_v41 = vld [vmem:[%s1410_s2 + $0x10] sm:$0xff] }
  0xae   :  { %v248_v44 = vmax.f32 %v240_v40, 0.0  ;;  %v166_v60 = vpop.f32.mrf.mxu2  ;;  %v975_v40 = vld [vmem:[#allocation5 + $0x58] sm:$0xf0]  ;;  %685 = vperm.xlu1 %1049, %v667_v41  }
  0xaf   :  { %v233_v61 = vpop.f32.mrf.mxu3 }
  0xb0   :  { %v254_v45 = vpack.c.bf16 %v248_v44, %v247_v43  ;;  %v234_v63 = vadd.f32 %v233_v61, %v166_v60  ;;  %v978_v43 = vor.u32 %v1031_v39, %v975_v40  ;;  %v965_v44 = vld [vmem:[#allocation5 + $0x40] sm:$0xf]  ;;  %680 = vperm.xlu0 %1048, %v666_v34  }
  0xb2   :  { %335 = vmatmul.bf16.gmra.mxu2 %v254_v45  ;;  %v244_v1 = vadd.f32 %v236_v22, %v234_v63  ;;  %v1030_v45 = vld [vmem:[#allocation5 + $0x44] sm:$0xf0]  ;;  %598 = vmatpush.bf16.msrb.mxu1 %v978_v43 }
  0xb3   :  { %v966_v50 = vor.u32 %v1030_v45, %v965_v44  ;;  %v669_v44 = vld [vmem:[%s1410_s2 + $0x20] sm:$0xff]  ;;  %v668_v45 = vld [vmem:[%s1410_s2 + $0x18] sm:$0xff] }
  0xb4   :  { %v252_v3 = vmax.f32 %v244_v1, 0.0  ;;  %v1027_v1 = vld [vmem:[#allocation5 + $0x34] sm:$0xf]  ;;  %695 = vperm.xlu2 %1050, %v669_v44  }
  0xb5   :  { %570 = vmatpush.bf16.msrb.mxu0 %v966_v50 }
  0xb6   :  { %v256_v4 = vpack.c.bf16 %v252_v3, %v251_v2  ;;  %599 = vmatpush.bf16.msrb.mxu1 %v970_v53  ;;  %v959_v2 = vld [vmem:[#allocation5 + $0x38] sm:$0xf0]  ;;  %690 = vperm.xlu1 %1049, %v668_v45   ;;  %v672_v53 = vld [vmem:[%s1410_s2 + $0x38] sm:$0xff]  ;;  %v80_v45 = vld [vmem:[#allocation7 + $0x8] sm:$0xff] }
  0xb7   :  { %v962_v3 = vor.u32 %v1027_v1, %v959_v2  ;;  %v1380_v2 = vperm.slane %v1312_v20, 3 }
  0xb9   :  { %571 = vmatpush.bf16.msrb.mxu0 %v958_v57 }
  0xba   :  { %600 = vmatpush.bf16.msrb.mxu1 %v962_v3 }
  0xbe   :  { %710 = vperm.xlu1 %1049, %v672_v53   ;;  %v1391_v53 = vperm.slane %v80_v45, 3 }
  0xc2   :  { %340 = vmatmul.bf16.gmra.mxu2 %v255_v58 }
  0xd2   :  { %345 = vmatmul.bf16.gmra.mxu2 %v256_v4  ;;  %v949_v4 = vld [vmem:[#allocation5 + $0x20] sm:$0xf] }
  0xd3   :  { %v950_v7 = vor.u32 %v1026_v5, %v949_v4 }
  0xd5   :  { %572 = vmatpush.bf16.msrb.mxu0 %v950_v7 }
 0x10e   :  { %v696_v41 = vpop.permute.xlu2 %695 }
 0x120   :  { %v686_v34 = vpop.permute.xlu1 %685 }
 0x125   :  { %v331_v8 = vpop.f32.mrf.mxu2 }
 0x126   :  { %v332_v10 = vadd.f32 %v331_v8, %v1340_v9  ;;  %v951_v8 = vld [vmem:[#allocation5 + $0x28] sm:$0xf0] }
 0x128   :  { %v351_v13 = vmax.f32 %v332_v10, 0.0  ;;  %v954_v10 = vor.u32 %v1025_v6, %v951_v8 }
 0x12a   :  { %601 = vmatpush.bf16.msrb.mxu1 %v954_v10 }
 0x12d   :  { %v333_v11 = vpop.f32.mrf.mxu2 }
 0x12e   :  { %v334_v12 = vadd.f32 %v333_v11, %v1340_v9  ;;  %v941_v11 = vld [vmem:[#allocation5 + $0x10] sm:$0xf] }
 0x130   :  { %v352_v14 = vmax.f32 %v334_v12, 0.0  ;;  %v1024_v12 = vld [vmem:[#allocation5 + $0x14] sm:$0xf0] }
 0x132   :  { %v359_v15 = vpack.c.bf16 %v352_v14, %v351_v13  ;;  %v942_v13 = vor.u32 %v1024_v12, %v941_v11  ;;  %v943_v14 = vld [vmem:[#allocation5 + $0x18] sm:$0xf0] }
 0x134   :  { %436 = vmatmul.bf16.vlgmr.msrb.gmra.mxu3 %v359_v15  ;;  %573 = vmatpush.bf16.msrb.mxu0 %v942_v13 }
 0x135   :  { %v336_v16 = vpop.f32.mrf.mxu2 }
 0x136   :  { %v337_v17 = vadd.f32 %v336_v16, %v1340_v9  ;;  %v933_v16 = vld [vmem:[#allocation5] sm:$0xf] }
 0x138   :  { %v353_v21 = vmax.f32 %v337_v17, 0.0  ;;  %v1022_v17 = vld [vmem:[#allocation5 + $0x4] sm:$0xf0] }
 0x13d   :  { %v338_v18 = vpop.f32.mrf.mxu2 }
 0x13e   :  { %v339_v19 = vadd.f32 %v338_v18, %v1340_v9  ;;  %v1021_v18 = vld [vmem:[#allocation5 + $0x4] sm:$0xf] }
 0x140   :  { %v354_v22 = vmax.f32 %v339_v19, 0.0  ;;  %v934_v19 = vor.u32 %v1022_v17, %v933_v16 }
 0x142   :  { %v360_v23 = vpack.c.bf16 %v354_v22, %v353_v21  ;;  %v935_v21 = vld [vmem:[#allocation5 + $0x8] sm:$0xf0]  ;;  %574 = vmatpush.bf16.msrb.mxu0 %v934_v19 }
 0x143   :  { %v938_v22 = vor.u32 %v1021_v18, %v935_v21 }
 0x144   :  { %441 = vmatmul.bf16.gmra.mxu3 %v360_v23 }
 0x145   :  { %v341_v27 = vpop.f32.mrf.mxu2 }
 0x146   :  { %v342_v42 = vadd.f32 %v341_v27, %v1340_v9 }
 0x148   :  { %v355_v51 = vmax.f32 %v342_v42, 0.0  ;;  %v671_v42 = vld [vmem:[%s1410_s2 + $0x30] sm:$0xff] }
 0x149   :  { %705 = vperm.xlu0 %1048, %v671_v42  }
 0x14d   :  { %v343_v46 = vpop.f32.mrf.mxu2 }
 0x14e   :  { %v344_v49 = vadd.f32 %v343_v46, %v1340_v9  ;;  %v670_v46 = vld [vmem:[%s1410_s2 + $0x28] sm:$0xff]  ;;  %s1193_s2 = smov [#allocation8]  }
 0x14f   :  { %700 = vperm.xlu2 %1050, %v670_v46   ;;  %s806_s13 = sshll.u32 %s1193_s2, 4  ;;  %s807_s13 = int_to_ptr.vmem [resolvable:$true] %s806_s13 }
 0x150   :  { %v356_v52 = vmax.f32 %v344_v49, 0.0 }
 0x152   :  { %v361_v56 = vpack.c.bf16 %v356_v52, %v355_v51 }
 0x154   :  { %446 = vmatmul.bf16.gmra.mxu3 %v361_v56 }
 0x155   :  { %v346_v58 = vpop.f32.mrf.mxu2 }
 0x156   :  { %v347_v59 = vadd.f32 %v346_v58, %v1340_v9 }
 0x158   :  { %v357_v62 = vmax.f32 %v347_v59, 0.0 }
 0x15d   :  { %v348_v60 = vpop.f32.mrf.mxu2 }
 0x15e   :  { %v349_v61 = vadd.f32 %v348_v60, %v1340_v9  ;;  %v1023_v9 = vld [vmem:[#allocation5 + $0x14] sm:$0xf] }
 0x15f   :  { %v946_v15 = vor.u32 %v1023_v9, %v943_v14 }
 0x160   :  { %v358_v63 = vmax.f32 %v349_v61, 0.0 }
 0x161   :  { %602 = vmatpush.bf16.msrb.mxu1 %v946_v15 }
 0x162   :  { %v362_v0 = vpack.c.bf16 %v358_v63, %v357_v62 }
 0x164   :  { %451 = vmatmul.bf16.gmra.mxu3 %v362_v0 }
 0x165   :  { %603 = vmatpush.bf16.msrb.mxu1 %v938_v22 }
 0x1b7   :  { %v437_v23 = vpop.f32.mrf.mxu3 }
 0x1b8   :  { %v438_v25 = vadd.f32 %v437_v23, %v379_v24 }
 0x1ba   :  { %v457_v28 = vmax.f32 %v438_v25, 0.0 }
 0x1bf   :  { %v439_v26 = vpop.f32.mrf.mxu3 }
 0x1c0   :  { %v440_v27 = vadd.f32 %v439_v26, %v379_v24 }
 0x1c2   :  { %v458_v29 = vmax.f32 %v440_v27, 0.0 }
 0x1c4   :  { %v465_v31 = vpack.c.bf16 %v458_v29, %v457_v28 }
 0x1c6   :  { %575 = vmatmul.bf16.vlgmr.msrb.gmra.mxu0 %v465_v31  ;;  %604 = vmatmul.bf16.vlgmr.msrb.gmra.mxu1 %v465_v31  ;;  %v676_v31 = vpop.permute.xlu0 %675 }
 0x1c7   :  { %v442_v33 = vpop.f32.mrf.mxu3 }
 0x1c8   :  { %v443_v35 = vadd.f32 %v442_v33, %v379_v24 }
 0x1ca   :  { %v459_v38 = vmax.f32 %v443_v35, 0.0 }
 0x1cf   :  { %v444_v36 = vpop.f32.mrf.mxu3 }
 0x1d0   :  { %v445_v37 = vadd.f32 %v444_v36, %v379_v24 }
 0x1d2   :  { %v460_v39 = vmax.f32 %v445_v37, 0.0 }
 0x1d4   :  { %v466_v40 = vpack.c.bf16 %v460_v39, %v459_v38 }
 0x1d6   :  { %580 = vmatmul.bf16.gmra.mxu0 %v466_v40  ;;  %609 = vmatmul.bf16.gmra.mxu1 %v466_v40 }
 0x1d7   :  { %v447_v43 = vpop.f32.mrf.mxu3 }
 0x1d8   :  { %v448_v47 = vadd.f32 %v447_v43, %v379_v24 }
 0x1da   :  { %v461_v50 = vmax.f32 %v448_v47, 0.0 }
 0x1df   :  { %v449_v48 = vpop.f32.mrf.mxu3 }
 0x1e0   :  { %v450_v49 = vadd.f32 %v449_v48, %v379_v24  ;;  %v681_v48 = vpop.permute.xlu0 %680 }
 0x1e2   :  { %v462_v51 = vmax.f32 %v450_v49, 0.0 }
 0x1e4   :  { %v467_v52 = vpack.c.bf16 %v462_v51, %v461_v50  ;;  %v691_v51 = vpop.permute.xlu1 %690 }
 0x1e6   :  { %585 = vmatmul.bf16.gmra.mxu0 %v467_v52  ;;  %614 = vmatmul.bf16.gmra.mxu1 %v467_v52 }
 0x1e7   :  { %v452_v54 = vpop.f32.mrf.mxu3 }
 0x1e8   :  { %v453_v55 = vadd.f32 %v452_v54, %v379_v24 }
 0x1ea   :  { %v463_v58 = vmax.f32 %v453_v55, 0.0 }
 0x1ef   :  { %v454_v56 = vpop.f32.mrf.mxu3 }
 0x1f0   :  { %v455_v57 = vadd.f32 %v454_v56, %v379_v24 }
 0x1f2   :  { %v464_v59 = vmax.f32 %v455_v57, 0.0 }
 0x1f4   :  { %v468_v60 = vpack.c.bf16 %v464_v59, %v463_v58 }
 0x1f6   :  { %590 = vmatmul.bf16.gmra.mxu0 %v468_v60  ;;  %619 = vmatmul.bf16.gmra.mxu1 %v468_v60 }
 0x243   :  { %v576_v61 = vpop.f32.mrf.mxu0  ;;  %v1375_v62 = vpop.f32.mrf.mxu1 }
 0x244   :  { %v577_v3 = vadd.f32 %v576_v61, %v1380_v2 }
 0x246   :  { %v625_v7 = vsub.f32 0.0, %v577_v3  ;;  %v606_v3 = vadd.f32 %v1375_v62, %v1391_v53 }
 0x248   :  { %v633_v13 = vmul.f32 1.442695, %v625_v7 }
 0x24a   :  { %1051 = vpow2.f32 %v633_v13 }
 0x24b   :  { %v578_v63 = vpop.f32.mrf.mxu0  ;;  %v1377_v0 = vpop.f32.mrf.mxu1 }
 0x24c   :  { %v579_v4 = vadd.f32 %v578_v63, %v1380_v2  ;;  %v608_v61 = vadd.f32 %v1377_v0, %v1391_v53 }
 0x24e   :  { %v626_v11 = vsub.f32 0.0, %v579_v4 }
 0x250   :  { %v635_v14 = vmul.f32 1.442695, %v626_v11  ;;  %v1052_v22 = vpop.eup %1051 }
 0x251   :  { %v649_v27 = vadd.f32 1.0, %v1052_v22 }
 0x252   :  { %1053 = vpow2.f32 %v635_v14 }
 0x253   :  { %v581_v1 = vpop.f32.mrf.mxu0  ;;  %v1386_v10 = vpop.f32.mrf.mxu1 }
 0x254   :  { %v582_v5 = vadd.f32 %v581_v1, %v1380_v2  ;;  %v611_v4 = vadd.f32 %v1386_v10, %v1391_v53 }
 0x256   :  { %v627_v12 = vsub.f32 0.0, %v582_v5 }
 0x258   :  { %v637_v15 = vmul.f32 1.442695, %v627_v12  ;;  %v1054_v24 = vpop.eup %1053 }
 0x259   :  { %v650_v30 = vadd.f32 1.0, %v1054_v24 }
 0x25a   :  { %1055 = vpow2.f32 %v637_v15 }
 0x25b   :  { %v583_v6 = vpop.f32.mrf.mxu0  ;;  %v612_v19 = vpop.f32.mrf.mxu1 }
 0x25c   :  { %v584_v8 = vadd.f32 %v583_v6, %v1380_v2  ;;  %v701_v6 = vpop.permute.xlu2 %700 }
 0x25e   :  { %v628_v9 = vsub.f32 0.0, %v584_v8  ;;  %v613_v8 = vadd.f32 %v612_v19, %v1391_v53 }
 0x260   :  { %v639_v16 = vmul.f32 1.442695, %v628_v9  ;;  %v1056_v26 = vpop.eup %1055 }
 0x261   :  { %v651_v33 = vadd.f32 1.0, %v1056_v26 }
 0x262   :  { %1057 = vpow2.f32 %v639_v16 }
 0x263   :  { %v586_v20 = vpop.f32.mrf.mxu0  ;;  %v615_v37 = vpop.f32.mrf.mxu1 }
 0x264   :  { %v587_v17 = vadd.f32 %v586_v20, %v1380_v2  ;;  %v616_v9 = vadd.f32 %v615_v37, %v1391_v53 }
 0x266   :  { %v629_v18 = vsub.f32 0.0, %v587_v17 }
 0x268   :  { %v641_v21 = vmul.f32 1.442695, %v629_v18  ;;  %v1058_v28 = vpop.eup %1057 }
 0x269   :  { %v652_v36 = vadd.f32 1.0, %v1058_v28 }
 0x26a   :  { %1059 = vpow2.f32 %v641_v21 }
 0x26b   :  { %v588_v23 = vpop.f32.mrf.mxu0  ;;  %1061 = vrcp.f32 %v649_v27  ;;  %v617_v54 = vpop.f32.mrf.mxu1 }
 0x26c   :  { %v589_v25 = vadd.f32 %v588_v23, %v1380_v2  ;;  %v618_v15 = vadd.f32 %v617_v54, %v1391_v53 }
 0x26e   :  { %v630_v29 = vsub.f32 0.0, %v589_v25 }
 0x270   :  { %v1060_v32 = vpop.eup %1059  ;;  %v643_v35 = vmul.f32 1.442695, %v630_v29 }
 0x271   :  { %v653_v38 = vadd.f32 1.0, %v1060_v32  ;;  %v1062_v43 = vpop.eup %1061 }
 0x272   :  { %1063 = vpow2.f32 %v643_v35  ;;  %v713_v59 = vmul.f32 %v1062_v43, %v676_v31  ;;  %v706_v31 = vpop.permute.xlu0 %705 }
 0x273   :  { %1065 = vrcp.f32 %v650_v30  ;;  %v591_v39 = vpop.f32.mrf.mxu0  ;;  %v620_v19 = vpop.f32.mrf.mxu1 }
 0x274   :  { %1067 = vrcp.f32 %v651_v33  ;;  %v592_v40 = vadd.f32 %v591_v39, %v1380_v2  ;;  %v721_v13 = vmul.f32 %v713_v59, %v606_v3  ;;  %v621_v33 = vadd.f32 %v620_v19, %v1391_v53 }
 0x275   :  { %1069 = vrcp.f32 %v652_v36 }
 0x276   :  { %1071 = vrcp.f32 %v653_v38  ;;  %v631_v42 = vsub.f32 0.0, %v592_v40  ;;  %v729_v18 = vrot.slane %v721_v13, 4 }
 0x278   :  { %v1064_v44 = vpop.eup %1063  ;;  %v645_v46 = vmul.f32 1.442695, %v631_v42  ;;  %v730_v28 = vadd.f32 %v729_v18, %v721_v13 }
 0x279   :  { %v1066_v47 = vpop.eup %1065  ;;  %v654_v49 = vadd.f32 1.0, %v1064_v44 }
 0x27a   :  { %v1068_v50 = vpop.eup %1067  ;;  %1073 = vpow2.f32 %v645_v46  ;;  %v714_v57 = vmul.f32 %v1066_v47, %v681_v48  ;;  %v731_v39 = vrot.slane %v730_v28, 2 }
 0x27b   :  { %v1070_v52 = vpop.eup %1069  ;;  %1075 = vrcp.f32 %v654_v49  ;;  %v593_v55 = vpop.f32.mrf.mxu0  ;;  %v715_v60 = vmul.f32 %v1068_v50, %v686_v34 }
 0x27c   :  { %v1072_v56 = vpop.eup %1071  ;;  %v594_v58 = vadd.f32 %v593_v55, %v1380_v2  ;;  %v716_v63 = vmul.f32 %v1070_v52, %v691_v51  ;;  %v722_v11 = vmul.f32 %v714_v57, %v608_v61  ;;  %v622_v44 = vpop.f32.mrf.mxu1  ;;  %v732_v49 = vadd.f32 %v731_v39, %v730_v28 }
 0x27d   :  { %v717_v5 = vmul.f32 %v1072_v56, %v696_v41  ;;  %v723_v0 = vmul.f32 %v715_v60, %v611_v4  ;;  %v711_v51 = vpop.permute.xlu1 %710  ;;  %v623_v54 = vadd.f32 %v622_v44, %v1391_v53 }
 0x27e   :  { %v632_v1 = vsub.f32 0.0, %v594_v58  ;;  %v724_v20 = vmul.f32 %v716_v63, %v613_v8  ;;  %v735_v16 = vrot.slane %v722_v11, 4 }
 0x27f   :  { %v725_v10 = vmul.f32 %v717_v5, %v616_v9  ;;  %v741_v21 = vrot.slane %v723_v0, 4 }
 0x280   :  { %v1074_v7 = vpop.eup %1073  ;;  %v647_v2 = vmul.f32 1.442695, %v632_v1  ;;  %v747_v22 = vrot.slane %v724_v20, 4  ;;  %v736_v25 = vadd.f32 %v735_v16, %v722_v11  ;;  %v733_v1 = vrot.slane %v732_v49, 1 }
 0x281   :  { %v1076_v12 = vpop.eup %1075  ;;  %v655_v14 = vadd.f32 1.0, %v1074_v7  ;;  %v753_v23 = vrot.slane %v725_v10, 4  ;;  %v742_v29 = vadd.f32 %v741_v21, %v723_v0 }
 0x282   :  { %1077 = vpow2.f32 %v647_v2  ;;  %v718_v62 = vmul.f32 %v1076_v12, %v701_v6  ;;  %v748_v32 = vadd.f32 %v747_v22, %v724_v20  ;;  %v737_v36 = vrot.slane %v736_v25, 2 }
 0x283   :  { %1079 = vrcp.f32 %v655_v14  ;;  %v754_v35 = vadd.f32 %v753_v23, %v725_v10  ;;  %v743_v40 = vrot.slane %v742_v29, 2  ;;  %v734_v12 = vadd.f32 %v733_v1, %v732_v49 }
 0x284   :  { %v726_v17 = vmul.f32 %v718_v62, %v618_v15  ;;  %v749_v41 = vrot.slane %v748_v32, 2  ;;  %v738_v45 = vadd.f32 %v737_v36, %v736_v25 }
 0x285   :  { %v755_v43 = vrot.slane %v754_v35, 2  ;;  %v744_v50 = vadd.f32 %v743_v40, %v742_v29 }
 0x286   :  { %v759_v26 = vrot.slane %v726_v17, 4  ;;  %v750_v52 = vadd.f32 %v749_v41, %v748_v32  ;;  %v739_v58 = vrot.slane %v738_v45, 1 }
 0x287   :  { %v756_v57 = vadd.f32 %v755_v43, %v754_v35  ;;  %v745_v61 = vrot.slane %v744_v50, 1 }
 0x288   :  { %v1078_v24 = vpop.eup %1077  ;;  %v760_v38 = vadd.f32 %v759_v26, %v726_v17  ;;  %v751_v3 = vrot.slane %v750_v52, 1  ;;  %v740_v6 = vadd.f32 %v739_v58, %v738_v45 }
 0x289   :  { %v1080_v27 = vpop.eup %1079  ;;  %v656_v30 = vadd.f32 1.0, %v1078_v24  ;;  %v757_v5 = vrot.slane %v756_v57, 1  ;;  %v746_v11 = vadd.f32 %v745_v61, %v744_v50 }
 0x28a   :  { %v719_v34 = vmul.f32 %v1080_v27, %v706_v31  ;;  %v761_v47 = vrot.slane %v760_v38, 2  ;;  %v752_v53 = vadd.f32 %v751_v3, %v750_v52  ;;  %v786_v0 = vsel %vm785_vm1, %v740_v6, %v734_v12 }
 0x28b   :  { %1081 = vrcp.f32 %v656_v30  ;;  %v758_v9 = vadd.f32 %v757_v5, %v756_v57  ;;  %v788_v20 = vsel %vm787_vm2, %v746_v11, %v786_v0 }
 0x28c   :  { %v727_v37 = vmul.f32 %v719_v34, %v621_v33  ;;  %v762_v59 = vadd.f32 %v761_v47, %v760_v38  ;;  %v790_v10 = vsel %vm789_vm3, %v752_v53, %v788_v20 }
 0x28d   :  { %v792_v17 = vsel %vm791_vm4, %v758_v9, %v790_v10 }
 0x28e   :  { %v765_v42 = vrot.slane %v727_v37, 4  ;;  %v763_v7 = vrot.slane %v762_v59, 1 }
 0x290   :  { %v766_v46 = vadd.f32 %v765_v42, %v727_v37  ;;  %v764_v14 = vadd.f32 %v763_v7, %v762_v59 }
 0x291   :  { %v1082_v48 = vpop.eup %1081 }
 0x292   :  { %v767_v55 = vrot.slane %v766_v46, 2  ;;  %v720_v56 = vmul.f32 %v1082_v48, %v711_v51  ;;  %v794_v21 = vsel %vm793_vm5, %v764_v14, %v792_v17 }
 0x294   :  { %v728_v60 = vmul.f32 %v720_v56, %v623_v54  ;;  %v768_v63 = vadd.f32 %v767_v55, %v766_v46 }
 0x296   :  { %v771_v4 = vrot.slane %v728_v60, 4  ;;  %v769_v2 = vrot.slane %v768_v63, 1 }
 0x298   :  { %v772_v8 = vadd.f32 %v771_v4, %v728_v60  ;;  %v770_v62 = vadd.f32 %v769_v2, %v768_v63 }
 0x29a   :  { %v773_v13 = vrot.slane %v772_v8, 2  ;;  %v796_v19 = vsel %vm795_vm6, %v770_v62, %v794_v21 }
 0x29c   :  { %v774_v15 = vadd.f32 %v773_v13, %v772_v8 }
 0x29e   :  { %v775_v16 = vrot.slane %v774_v15, 1 }
 0x2a0   :  { %v776_v18 = vadd.f32 %v775_v16, %v774_v15 }
 0x2a2   :  { %v798_v22 = vsel %vm797_vm7, %v776_v18, %v796_v19 }
 0x2a3   :  { %800 = vst [vmem:[#allocation8] sm:$0xff] %v798_v22 }
 0x2a4   :  { %811 = dma.vmem_to_hbm [thread:$0]  %s807_s13, 128, %s809_s15, [#allocation4]  }
 0x2a5   :  { %1183 = dma.done.wait [#allocation4], 128  }
 0x2a6   :  { %1184 = vsyncadd [#allocation4], 4294967168 }
 0x2a7   :  { %816 = vsyncpa [#allocation3], 1 }
 0x2a8   :  { %817 = vsyncpa [#allocation6], 1 }
 0x2a9   :  { %818 = vsyncpa [#allocation4], 1 }

</bundles_post_ra>
